<compile_context>
chip_gen: v5e
topology: v5e:2x2
jax: 0.10.0
libtpu: 0.0.40
codegen_flags: <defaults>
</compile_context>

<pallas_src>
import functools

import jax
import jax.numpy as jnp
from jax import lax
from jax.experimental import pallas as pl
from jax.experimental.pallas import tpu as pltpu

OUT_DIM = 16


def _round_up(v, m):
    return (v + m - 1) // m * m


def speaker_embed_kernel(x_ref, w_ref, b_ref, o_ref, acc_ref, *, valid_rows):
    k = pl.program_id(0)

    @pl.when(k == 0)
    def _init():
        acc_ref[...] = jnp.zeros_like(acc_ref)

    # Partial linear: [B_pad, tk] @ [tk, 16] accumulated in f32 on the MXU.
    acc_ref[...] += jnp.dot(
        x_ref[...], w_ref[...], preferred_element_type=jnp.float32
    )

    @pl.when(k == pl.num_programs(0) - 1)
    def _epilogue():
        lin = acc_ref[...] + b_ref[...]  # [B_pad, 16]
        if valid_rows is not None:
            # Zero-padded batch rows pick up the bias; mask them out of the norm.
            row = lax.broadcasted_iota(jnp.int32, lin.shape, 0)
            sq = jnp.where(row < valid_rows, lin * lin, 0.0)
        else:
            sq = lin * lin
        # torch.norm(out, p=2, dim=0): reduction over the (full) batch axis.
        sumsq = jnp.sum(sq, axis=0, keepdims=True)  # [1, 16]
        # Matches PyTorch: no eps, all-zero column -> inf/nan.
        inv = lax.rsqrt(sumsq)  # EUP, effectively free
        o_ref[...] = (lin * inv).astype(o_ref.dtype)


def speaker_voice_embedder(x, w, b, *, input_dtype=None, tk=None):
    """x: [B, in_dim], w: [in_dim, 16] (pre-transposed nn.Linear weight), b: [16]."""
    B, in_dim = x.shape
    assert w.shape == (in_dim, OUT_DIM)
    assert b.shape == (OUT_DIM,)

    compute_dtype = jnp.dtype(input_dtype) if input_dtype is not None else x.dtype
    bytes_per = jnp.dtype(compute_dtype).itemsize

    # Pad batch to a multiple of 8 so (B_pad, tk) blocks satisfy the sublane rule.
    B_pad = _round_up(B, 8)

    # Pick tk: target ~2 MiB per x tile, multiple of 128 lanes; single K block if
    # in_dim already fits (block == full dim bypasses the 128 divisibility rule).
    if tk is None:
        target_tile_bytes = 2 << 20
        tk = max(128, (target_tile_bytes // max(B_pad * bytes_per, 1)) // 128 * 128)
    if in_dim <= tk:
        tk = in_dim
        K_pad = in_dim
    else:
        K_pad = _round_up(in_dim, tk)  # zero-pad contraction dim (no effect on result)
    nk = K_pad // tk

    x_p = x.astype(compute_dtype)
    w_p = w.astype(compute_dtype)
    if B_pad != B or K_pad != in_dim:
        x_p = jnp.pad(x_p, ((0, B_pad - B), (0, K_pad - in_dim)))
    if K_pad != in_dim:
        w_p = jnp.pad(w_p, ((0, K_pad - in_dim), (0, 0)))
    b2d = b.reshape(1, OUT_DIM).astype(jnp.float32)

    # Explicit VMEM budget: double-buffered x/w tiles + f32 accumulator + output
    # (16-wide tensors are lane-padded to 128 in VMEM).
    est = (
        2 * B_pad * tk * bytes_per
        + 2 * tk * 128 * bytes_per
        + B_pad * 128 * 4          # accumulator scratch
        + 2 * B_pad * 128 * 4      # output block
        + 8 * 128 * 4              # bias
    )
    vmem_limit = int(min(max(est + (4 << 20), 32 << 20), 64 << 20))

    kernel = functools.partial(
        speaker_embed_kernel, valid_rows=None if B_pad == B else B
    )

    out = pl.pallas_call(
        kernel,
        out_shape=jax.ShapeDtypeStruct((B_pad, OUT_DIM), jnp.float32),
        grid_spec=pltpu.PrefetchScalarGridSpec(
            num_scalar_prefetch=0,
            grid=(nk,),
            in_specs=[
                pl.BlockSpec((B_pad, tk), lambda k: (0, k)),
                pl.BlockSpec((tk, OUT_DIM), lambda k: (k, 0)),
                pl.BlockSpec((1, OUT_DIM), lambda k: (0, 0)),
            ],
            out_specs=pl.BlockSpec((B_pad, OUT_DIM), lambda k: (0, 0)),
            scratch_shapes=[pltpu.VMEM((B_pad, OUT_DIM), jnp.float32)],
        ),
        compiler_params=pltpu.CompilerParams(
            dimension_semantics=("arbitrary",),  # K is a reduction axis
            vmem_limit_bytes=vmem_limit,
        ),
    )(x_p, w_p, b2d)

    return out[:B] if B_pad != B else out


def _reference(x, w, b):
    lin = x @ w + b
    return lin / jnp.sqrt(jnp.sum(lin * lin, axis=0, keepdims=True))


if __name__ == "__main__":
    key = jax.random.PRNGKey(0)

    # Case 1: small shape matching the module spirit (batch=8, hidden=32); nk == 1.
    B, in_dim = 8, 32
    kx, kw, kb = jax.random.split(key, 3)
    x = jax.random.normal(kx, (B, in_dim), dtype=jnp.float32)
    # nn.Linear(in_dim, 16) weight stored pre-transposed as [in_dim, 16].
    w = jax.random.normal(kw, (in_dim, OUT_DIM), dtype=jnp.float32) / jnp.sqrt(in_dim)
    b = jax.random.normal(kb, (OUT_DIM,), dtype=jnp.float32) * 0.01

    out = speaker_voice_embedder(x, w, b)
    jax.block_until_ready(out)
    ref = _reference(x, w, b)
    assert out.shape == (B, OUT_DIM)
    assert jnp.allclose(out, ref, atol=1e-5, rtol=1e-5)

    # Case 2: exercise the K-tiled accumulator path (nk=2) and the batch-pad mask.
    B2, in_dim2 = 6, 256
    kx2, kw2, kb2 = jax.random.split(jax.random.PRNGKey(1), 3)
    x2 = jax.random.normal(kx2, (B2, in_dim2), dtype=jnp.float32)
    w2 = jax.random.normal(kw2, (in_dim2, OUT_DIM), dtype=jnp.float32) / jnp.sqrt(in_dim2)
    b2 = jax.random.normal(kb2, (OUT_DIM,), dtype=jnp.float32) * 0.01

    out2 = speaker_voice_embedder(x2, w2, b2, tk=128)
    jax.block_until_ready(out2)
    ref2 = _reference(x2, w2, b2)
    assert out2.shape == (B2, OUT_DIM)
    assert jnp.allclose(out2, ref2, atol=1e-4, rtol=1e-4)

    print("KERNEL_OK")
</pallas_src>

<mosaic_0001>
module attributes {stable_mosaic.version = 11 : i64} {
  func.func @speaker_embed_kernel(%arg0: i32, %arg1: memref<8x32xf32, #tpu.memory_space<vmem>>, %arg2: memref<32x16xf32, #tpu.memory_space<vmem>>, %arg3: memref<1x16xf32, #tpu.memory_space<vmem>>, %arg4: memref<8x16xf32, #tpu.memory_space<vmem>>, %arg5: memref<8x16xf32, #tpu.memory_space<vmem>>) attributes {dimension_semantics = [#tpu.dimension_semantics<arbitrary>], iteration_bounds = array<i64: 1>, scalar_prefetch = 0 : i64, scratch_operands = 1 : i64, tpu.core_type = #tpu.core_type<tc>, window_params = [{transform_indices = @transform_0, window_bounds = array<i64: 8, 32>}, {transform_indices = @transform_1, window_bounds = array<i64: 32, 16>}, {pipeline_mode = #tpu.pipeline_mode<synchronous>, transform_indices = @transform_2, window_bounds = array<i64: 1, 16>}, {pipeline_mode = #tpu.pipeline_mode<synchronous>, transform_indices = @transform_3, window_bounds = array<i64: 8, 16>}]} {
    %c0_i32 = arith.constant 0 : i32
    %0 = arith.cmpi eq, %arg0, %c0_i32 : i32
    %1 = arith.extui %0 : i1 to i32
    %c0_i32_0 = arith.constant 0 : i32
    %2 = arith.cmpi ne, %1, %c0_i32_0 : i32
    scf.if %2 {
      %cst_10 = arith.constant 0.000000e+00 : f32
      %12 = vector.broadcast %cst_10 : f32 to vector<8x16xf32>
      %c0_11 = arith.constant 0 : index
      %c0_12 = arith.constant 0 : index
      %13 = vector.load %arg5[%c0_11, %c0_12] : memref<8x16xf32, #tpu.memory_space<vmem>>, vector<8x16xf32>
      tpu.vector_store %arg5[%c0_11, %c0_12], %12 {strides = array<i32>} : memref<8x16xf32, #tpu.memory_space<vmem>>, vector<8x16xf32>,
    } else {
    }
    %c0 = arith.constant 0 : index
    %c0_1 = arith.constant 0 : index
    %3 = vector.load %arg5[%c0, %c0_1] : memref<8x16xf32, #tpu.memory_space<vmem>>, vector<8x16xf32>
    %c0_2 = arith.constant 0 : index
    %c0_3 = arith.constant 0 : index
    %4 = vector.load %arg1[%c0_2, %c0_3] : memref<8x32xf32, #tpu.memory_space<vmem>>, vector<8x32xf32>
    %c0_4 = arith.constant 0 : index
    %c0_5 = arith.constant 0 : index
    %5 = vector.load %arg2[%c0_4, %c0_5] : memref<32x16xf32, #tpu.memory_space<vmem>>, vector<32x16xf32>
    %cst = arith.constant dense<0.000000e+00> : vector<8x16xf32>
    %6 = tpu.matmul %4, %5, %cst {dimension_numbers = #tpu.dot_dimension_numbers<[1], [0], [0], [1], [0, 0, 1, 1], [], []>} : vector<8x32xf32>, vector<32x16xf32>, vector<8x16xf32> -> vector<8x16xf32>
    %7 = arith.addf %3, %6 : vector<8x16xf32>
    %c0_6 = arith.constant 0 : index
    %c0_7 = arith.constant 0 : index
    %8 = vector.load %arg5[%c0_6, %c0_7] : memref<8x16xf32, #tpu.memory_space<vmem>>, vector<8x16xf32>
    tpu.vector_store %arg5[%c0_6, %c0_7], %7 {strides = array<i32>} : memref<8x16xf32, #tpu.memory_space<vmem>>, vector<8x16xf32>,
    %c0_i32_8 = arith.constant 0 : i32
    %9 = arith.cmpi eq, %arg0, %c0_i32_8 : i32
    %10 = arith.extui %9 : i1 to i32
    %c0_i32_9 = arith.constant 0 : i32
    %11 = arith.cmpi ne, %10, %c0_i32_9 : i32
    scf.if %11 {
      %c0_10 = arith.constant 0 : index
      %c0_11 = arith.constant 0 : index
      %12 = vector.load %arg5[%c0_10, %c0_11] : memref<8x16xf32, #tpu.memory_space<vmem>>, vector<8x16xf32>
      %c0_12 = arith.constant 0 : index
      %c0_13 = arith.constant 0 : index
      %13 = vector.load %arg3[%c0_12, %c0_13] : memref<1x16xf32, #tpu.memory_space<vmem>>, vector<1x16xf32>
      %14 = vector.broadcast %13 : vector<1x16xf32> to vector<8x16xf32>
      %15 = arith.addf %12, %14 : vector<8x16xf32>
      %16 = arith.mulf %15, %15 : vector<8x16xf32>
      %cst_14 = arith.constant dense<0.000000e+00> : vector<16xf32>
      %17 = vector.multi_reduction <add>, %16, %cst_14 [0] : vector<8x16xf32> to vector<16xf32>
      %18 = vector.shape_cast %17 : vector<16xf32> to vector<1x16xf32>
      %19 = math.rsqrt %18 : vector<1x16xf32>
      %20 = vector.broadcast %19 : vector<1x16xf32> to vector<8x16xf32>
      %21 = arith.mulf %15, %20 : vector<8x16xf32>
      %c0_15 = arith.constant 0 : index
      %c0_16 = arith.constant 0 : index
      %22 = vector.load %arg4[%c0_15, %c0_16] : memref<8x16xf32, #tpu.memory_space<vmem>>, vector<8x16xf32>
      tpu.vector_store %arg4[%c0_15, %c0_16], %21 {strides = array<i32>} : memref<8x16xf32, #tpu.memory_space<vmem>>, vector<8x16xf32>,
    } else {
    }
    return
  }
  func.func @transform_0(%arg0: i32) -> (i32, i32) {
    %c0_i32 = arith.constant 0 : i32
    %c0_i32_0 = arith.constant 0 : i32
    return %c0_i32, %arg0 : i32, i32
  }
  func.func @transform_1(%arg0: i32) -> (i32, i32) {
    %c0_i32 = arith.constant 0 : i32
    %c0_i32_0 = arith.constant 0 : i32
    return %arg0, %c0_i32 : i32, i32
  }
  func.func @transform_2(%arg0: i32) -> (i32, i32) {
    %c0_i32 = arith.constant 0 : i32
    %c0_i32_0 = arith.constant 0 : i32
    %c0_i32_1 = arith.constant 0 : i32
    return %c0_i32, %c0_i32_0 : i32, i32
  }
  func.func @transform_3(%arg0: i32) -> (i32, i32) {
    %c0_i32 = arith.constant 0 : i32
    %c0_i32_0 = arith.constant 0 : i32
    %c0_i32_1 = arith.constant 0 : i32
    return %c0_i32, %c0_i32_0 : i32, i32
  }
}

</mosaic_0001>

<bundles_post_ra>
// kernel: tpu_custom_call.1
= control target key start
LH: loop header
LB: loop body
LE: loop exit
PB: predicated region body
PF: predicated region fallthrough
CT: control target
= control target key end

     0   :  { %vm19_vm0 = vcmask 130048   ;;  %v131_v2 = vmov 0.0   ;;  %s178_s0 = inlined_call_operand.vmem [shape: f32[8,32], index: 0, kind: input, shape index: {}]   ;;  %s179_s1 = inlined_call_operand.vmem [shape: f32[32,16], index: 1, kind: input, shape index: {}]   ;;  %s180_s2 = inlined_call_operand.vmem [shape: f32[1,16], index: 2, kind: input, shape index: {}]   ;;  %s181_s3 = inlined_call_operand.hbm [shape: f32[8,16], index: 3, kind: output, shape index: {}]  }
   0x1   :  { %v26_v0 = vld [vmem:[%s179_s1 + $0x18] sm:$0xff]  ;;  %v25_v1 = vld [vmem:[%s179_s1 + $0x10] sm:$0xff]  ;;  %20 = vst.msk [vmem:[#allocation2] sm:$0xff] %vm19_vm0, %v131_v2 }
   0x2   :  { %43 = vmatpush.msra.mxu0 %v26_v0 }
   0x3   :  { %8 = vsyncpa [#allocation4], 0  ;;  %v24_v3 = vld [vmem:[%s179_s1 + $0x8] sm:$0xff]  ;;  %v23_v4 = vld [vmem:[%s179_s1] sm:$0xff]  ;;  %vm27_vm1 = vcmask 261120   ;;  %s90_s25 = sshll.u32 %s181_s3, 4  ;;  %s91_s25 = int_to_ptr.hbm [resolvable:$true] %s90_s25 }
   0x4   :  { %44 = vmatpush.msra.mxu0 %v25_v1  ;;  %v22_v5 = vld [vmem:[%s178_s0] sm:$0xff]  ;;  %s132_s0 = smov [#allocation3]  }
   0x5   :  { %v102_v9 = vld [vmem:[%s180_s2] ss:$0 sm:$0xff]  ;;  %s88_s1 = sshll.u32 %s132_s0, 4  ;;  %s89_s1 = int_to_ptr.vmem [resolvable:$true] %s88_s1 }
   0x6   :  { %45 = vmatpush.msra.mxu0 %v24_v3 }
   0x8   :  { %46 = vmatpush.msra.mxu0 %v23_v4  ;;  %v21_v6 = vld [vmem:[#allocation2] sm:$0xff] }
   0x9   :  { %99 = vmatmul.msk.f32.vlgmr.msra.gmra.mxu0 %vm27_vm1, %v22_v5 }
  0x86   :  { %v48_v7 = vpop.f32.mrf.mxu0 }
  0x87   :  { %v51_v8 = vadd.f32 %v48_v7, %v21_v6 }
  0x89   :  { %53 = vst.msk [vmem:[#allocation2] sm:$0xff] %vm19_vm0, %v51_v8 }
  0x90   :  { %v57_v10 = vld [vmem:[#allocation2] sm:$0xff] }
  0x91   :  { %v62_v11 = vadd.f32 %v102_v9, %v57_v10 }
  0x93   :  { %v63_v12 = vmul.f32 %v62_v11, %v62_v11 }
  0x95   :  { %v64_v13 = vsel %vm19_vm0, %v63_v12, 0.0 }
  0x96   :  { %v65_v14 = vrot.slane %v64_v13, 4 }
  0x98   :  { %v66_v15 = vadd.f32 %v65_v14, %v64_v13 }
  0x9a   :  { %v67_v16 = vrot.slane %v66_v15, 2 }
  0x9c   :  { %v68_v17 = vadd.f32 %v67_v16, %v66_v15 }
  0x9e   :  { %v69_v18 = vrot.slane %v68_v17, 1 }
  0xa0   :  { %v70_v19 = vadd.f32 %v69_v18, %v68_v17 }
  0xa2   :  { %103 = vrsqrt.f32 %v70_v19  ;;  %vm77_vm3 = vweird.f32 %v70_v19 }
  0xa8   :  { %v104_v20 = vpop.eup %103 }
  0xa9   :  { %v72_v21 = vmul.f32 %v104_v20, %v70_v19  ;;  %vm78_vm2 = vweird.f32 %v104_v20 }
  0xaa   :  { %vm79_vm4 = vmor %vm77_vm3, %vm78_vm2 }
  0xab   :  { %v73_v22 = vmul.f32 %v104_v20, %v72_v21 }
  0xad   :  { %v74_v23 = vmul.f32 0.5, %v73_v22 }
  0xaf   :  { %v75_v24 = vsub.f32 1.5, %v74_v23 }
  0xb1   :  { %v76_v25 = vmul.f32 %v104_v20, %v75_v24 }
  0xb3   :  { %v80_v26 = vsel %vm79_vm4, %v104_v20, %v76_v25 }
  0xb4   :  { %v81_v27 = vmul.f32 %v80_v26, %v62_v11 }
  0xb6   :  { %82 = vst.msk [vmem:[#allocation3] sm:$0xff] %vm19_vm0, %v81_v27 }
  0xb7   :  { %93 = dma.vmem_to_hbm [thread:$0]  %s89_s1, 128, %s91_s25, [#allocation4]  }
  0xb8   :  { %129 = dma.done.wait [#allocation4], 128  }
  0xb9   :  { %130 = vsyncadd [#allocation4], 4294967168 }
  0xba   :  { %98 = vsyncpa [#allocation4], 1 }

</bundles_post_ra>
